<compile_context>
chip_gen: v6e
topology: v6e:2x2x1
jax: 0.10.0
libtpu: 0.0.40
codegen_flags: <defaults>
</compile_context>

<pallas_src>
import functools

import jax
import jax.numpy as jnp
from jax.experimental import pallas as pl
from jax.experimental.pallas import tpu as pltpu


def _make_kernel(inv_action_dim, mm_dtype):
    def kernel(state_ref, w1_ref, b1_ref, w2_ref, b2_ref,
               wv1_ref, bv1_ref, wv2_ref, bv2_ref,
               wa1_ref, ba1_ref, wa2_ref, ba2_ref, o_ref):
        # ---- shared trunk: Linear -> ReLU -> Linear -> ReLU ----
        x = state_ref[...].astype(mm_dtype)                               # [TB, S]
        h = jnp.dot(x, w1_ref[...].astype(mm_dtype),
                    preferred_element_type=jnp.float32) + b1_ref[...]
        h = jnp.maximum(h, 0.0)                                           # [TB, mid] f32
        t = jnp.dot(h.astype(mm_dtype), w2_ref[...].astype(mm_dtype),
                    preferred_element_type=jnp.float32) + b2_ref[...]
        t = jnp.maximum(t, 0.0)                                           # [TB, mid] f32

        # ---- value head: Linear -> ReLU -> Linear(mid, 1) ----
        hv = jnp.dot(t.astype(mm_dtype), wv1_ref[...].astype(mm_dtype),
                     preferred_element_type=jnp.float32) + bv1_ref[...]
        hv = jnp.maximum(hv, 0.0)                                         # [TB, mid]
        # 1-output-column Linear as mul + lane reduce (VPU/XLU, not MXU).
        val = jnp.sum(hv * wv2_ref[...], axis=-1, keepdims=True) + bv2_ref[0]  # [TB, 1]

        # ---- advantage head: Linear -> ReLU -> Linear(mid, A_pad) ----
        ha = jnp.dot(t.astype(mm_dtype), wa1_ref[...].astype(mm_dtype),
                     preferred_element_type=jnp.float32) + ba1_ref[...]
        ha = jnp.maximum(ha, 0.0)                                         # [TB, mid]
        adv = jnp.dot(ha.astype(mm_dtype), wa2_ref[...].astype(mm_dtype),
                      preferred_element_type=jnp.float32) + ba2_ref[...]  # [TB, A_pad]
        # Padded columns of adv are exactly zero, so the full-lane sum equals
        # the sum over the real action_dim columns.
        adv_mean = jnp.sum(adv, axis=-1, keepdims=True) * inv_action_dim  # [TB, 1]

        # ---- dueling combine ----
        o_ref[...] = val + adv - adv_mean                                 # [TB, A_pad]
    return kernel


@functools.partial(jax.jit, static_argnames=("batch_tile", "mm_dtype"))
def qnet_twin_duel_forward(state, params, *, batch_tile=256, mm_dtype=jnp.float32):
    """Pallas implementation of QNetTwinDuel.forward(state) (q1 head)."""
    w1, b1, w2, b2, wv1, bv1, wv2_row, bv2, wa1, ba1, wa2, ba2 = params

    state = state.astype(jnp.float32)
    B, S = state.shape
    mid = w1.shape[1]
    A = wa2.shape[1]
    A_pad = max(128, -(-A // 128) * 128)   # lane-dense head width

    # Zero-pad the advantage head to a lane-dense output width.
    wa2_p = jnp.pad(wa2.astype(jnp.float32), ((0, 0), (0, A_pad - A)))
    ba2_p = jnp.pad(ba2.astype(jnp.float32), ((0, 0), (0, A_pad - A)))

    # Optionally carry the big-matmul weights in bf16 (halves HBM/VMEM traffic
    # on v6e/v7x); biases & all elementwise math remain f32.
    if mm_dtype != jnp.float32:
        w1, w2, wv1, wa1 = (w.astype(mm_dtype) for w in (w1, w2, wv1, wa1))
        wa2_p = wa2_p.astype(mm_dtype)

    TB = min(batch_tile, B)
    assert B % TB == 0, "batch must be a multiple of the batch tile"
    grid = (B // TB,)

    wspec = lambda shape: pl.BlockSpec(shape, lambda i: (0, 0))  # VMEM-resident weights

    out_p = pl.pallas_call(
        _make_kernel(1.0 / A, mm_dtype),
        out_shape=jax.ShapeDtypeStruct((B, A_pad), jnp.float32),
        grid=grid,
        in_specs=[
            pl.BlockSpec((TB, S), lambda i: (i, 0)),     # state tile
            wspec((S, mid)),   wspec((1, mid)),          # trunk layer 1
            wspec((mid, mid)), wspec((1, mid)),          # trunk layer 2
            wspec((mid, mid)), wspec((1, mid)),          # val head layer 1
            wspec((1, mid)),                             # val head out row
            pl.BlockSpec(memory_space=pltpu.MemorySpace.SMEM),  # val head out bias (scalar)
            wspec((mid, mid)), wspec((1, mid)),          # adv head layer 1
            wspec((mid, A_pad)), wspec((1, A_pad)),      # adv head out (padded)
        ],
        out_specs=pl.BlockSpec((TB, A_pad), lambda i: (i, 0)),
        compiler_params=pltpu.CompilerParams(
            dimension_semantics=("parallel",)),
    )(state, w1, b1, w2, b2, wv1, bv1, wv2_row, bv2, wa1, ba1, wa2_p, ba2_p)

    return out_p[:, :A]


def init_qnet_params(key, state_dim, action_dim, mid_dim):
    """Synthetic params; weights stored [in_features, out_features]."""
    ks = jax.random.split(key, 12)
    sc = lambda fan_in: 1.0 / jnp.sqrt(jnp.float32(fan_in))
    nrm = lambda k, shape, s: jax.random.normal(k, shape, jnp.float32) * s

    w1 = nrm(ks[0], (state_dim, mid_dim), sc(state_dim))
    b1 = nrm(ks[1], (1, mid_dim), 0.1)
    w2 = nrm(ks[2], (mid_dim, mid_dim), sc(mid_dim))
    b2 = nrm(ks[3], (1, mid_dim), 0.1)

    wv1 = nrm(ks[4], (mid_dim, mid_dim), sc(mid_dim))
    bv1 = nrm(ks[5], (1, mid_dim), 0.1)
    wv2_row = nrm(ks[6], (1, mid_dim), sc(mid_dim))   # Linear(mid, 1) weight as a row
    bv2 = nrm(ks[7], (1,), 0.1)                        # scalar bias (SMEM)

    wa1 = nrm(ks[8], (mid_dim, mid_dim), sc(mid_dim))
    ba1 = nrm(ks[9], (1, mid_dim), 0.1)
    wa2 = nrm(ks[10], (mid_dim, action_dim), sc(mid_dim))
    ba2 = nrm(ks[11], (1, action_dim), 0.1)

    return (w1, b1, w2, b2, wv1, bv1, wv2_row, bv2, wa1, ba1, wa2, ba2)


def qnet_twin_duel_reference(state, params):
    """Pure-JAX reference matching the PyTorch forward()."""
    w1, b1, w2, b2, wv1, bv1, wv2_row, bv2, wa1, ba1, wa2, ba2 = params
    x = state.astype(jnp.float32)
    h = jnp.maximum(x @ w1 + b1, 0.0)
    t = jnp.maximum(h @ w2 + b2, 0.0)
    hv = jnp.maximum(t @ wv1 + bv1, 0.0)
    val = hv @ wv2_row.T + bv2                       # [B, 1]
    ha = jnp.maximum(t @ wa1 + ba1, 0.0)
    adv = ha @ wa2 + ba2                             # [B, A]
    return val + adv - adv.mean(axis=1, keepdims=True)


if __name__ == "__main__":
    key = jax.random.PRNGKey(0)
    k_s, k_p = jax.random.split(key)

    batch = 8          # multiple of 8 (sublane)
    state_dim = 12     # vector-state branch (len(state_dim) == 1)
    action_dim = 4
    mid_dim = 128      # lane-dense hidden width (multiple of 128)

    state = jax.random.normal(k_s, (batch, state_dim), jnp.float32)
    params = init_qnet_params(k_p, state_dim, action_dim, mid_dim)

    q = qnet_twin_duel_forward(state, params)
    q = jax.block_until_ready(q)

    q_ref = qnet_twin_duel_reference(state, params)
    assert q.shape == (batch, action_dim)
    assert jnp.allclose(q, q_ref, atol=1e-4, rtol=1e-4)

    print("KERNEL_OK")
</pallas_src>

<mosaic_0001>
module attributes {stable_mosaic.version = 11 : i64} {
  func.func @kernel(%arg0: i32, %arg1: memref<8x12xf32, #tpu.memory_space<vmem>>, %arg2: memref<12x128xf32, #tpu.memory_space<vmem>>, %arg3: memref<1x128xf32, #tpu.memory_space<vmem>>, %arg4: memref<128x128xf32, #tpu.memory_space<vmem>>, %arg5: memref<1x128xf32, #tpu.memory_space<vmem>>, %arg6: memref<128x128xf32, #tpu.memory_space<vmem>>, %arg7: memref<1x128xf32, #tpu.memory_space<vmem>>, %arg8: memref<1x128xf32, #tpu.memory_space<vmem>>, %arg9: memref<1xf32, #tpu.memory_space<smem>>, %arg10: memref<128x128xf32, #tpu.memory_space<vmem>>, %arg11: memref<1x128xf32, #tpu.memory_space<vmem>>, %arg12: memref<128x128xf32, #tpu.memory_space<vmem>>, %arg13: memref<1x128xf32, #tpu.memory_space<vmem>>, %arg14: memref<8x128xf32, #tpu.memory_space<vmem>>) attributes {dimension_semantics = [#tpu.dimension_semantics<parallel>], iteration_bounds = array<i64: 1>, scalar_prefetch = 0 : i64, scratch_operands = 0 : i64, tpu.core_type = #tpu.core_type<tc>, window_params = [{transform_indices = @transform_0, window_bounds = array<i64: 8, 12>}, {pipeline_mode = #tpu.pipeline_mode<synchronous>, transform_indices = @transform_1, window_bounds = array<i64: 12, 128>}, {pipeline_mode = #tpu.pipeline_mode<synchronous>, transform_indices = @transform_2, window_bounds = array<i64: 1, 128>}, {pipeline_mode = #tpu.pipeline_mode<synchronous>, transform_indices = @transform_3, window_bounds = array<i64: 128, 128>}, {pipeline_mode = #tpu.pipeline_mode<synchronous>, transform_indices = @transform_4, window_bounds = array<i64: 1, 128>}, {pipeline_mode = #tpu.pipeline_mode<synchronous>, transform_indices = @transform_5, window_bounds = array<i64: 128, 128>}, {pipeline_mode = #tpu.pipeline_mode<synchronous>, transform_indices = @transform_6, window_bounds = array<i64: 1, 128>}, {pipeline_mode = #tpu.pipeline_mode<synchronous>, transform_indices = @transform_7, window_bounds = array<i64: 1, 128>}, {transform_indices = @transform_8, window_bounds = array<i64: 1>}, {pipeline_mode = #tpu.pipeline_mode<synchronous>, transform_indices = @transform_9, window_bounds = array<i64: 128, 128>}, {pipeline_mode = #tpu.pipeline_mode<synchronous>, transform_indices = @transform_10, window_bounds = array<i64: 1, 128>}, {pipeline_mode = #tpu.pipeline_mode<synchronous>, transform_indices = @transform_11, window_bounds = array<i64: 128, 128>}, {pipeline_mode = #tpu.pipeline_mode<synchronous>, transform_indices = @transform_12, window_bounds = array<i64: 1, 128>}, {transform_indices = @transform_13, window_bounds = array<i64: 8, 128>}]} {
    %c0 = arith.constant 0 : index
    %c0_0 = arith.constant 0 : index
    %0 = vector.load %arg1[%c0, %c0_0] : memref<8x12xf32, #tpu.memory_space<vmem>>, vector<8x12xf32>
    %c0_1 = arith.constant 0 : index
    %c0_2 = arith.constant 0 : index
    %1 = vector.load %arg2[%c0_1, %c0_2] : memref<12x128xf32, #tpu.memory_space<vmem>>, vector<12x128xf32>
    %cst = arith.constant dense<0.000000e+00> : vector<8x128xf32>
    %2 = tpu.matmul %0, %1, %cst {dimension_numbers = #tpu.dot_dimension_numbers<[1], [0], [0], [1], [0, 0, 1, 1], [], []>} : vector<8x12xf32>, vector<12x128xf32>, vector<8x128xf32> -> vector<8x128xf32>
    %c0_3 = arith.constant 0 : index
    %c0_4 = arith.constant 0 : index
    %3 = vector.load %arg3[%c0_3, %c0_4] : memref<1x128xf32, #tpu.memory_space<vmem>>, vector<1x128xf32>
    %4 = vector.broadcast %3 : vector<1x128xf32> to vector<8x128xf32>
    %5 = arith.addf %2, %4 : vector<8x128xf32>
    %cst_5 = arith.constant 0.000000e+00 : f32
    %6 = vector.broadcast %cst_5 : f32 to vector<8x128xf32>
    %7 = arith.maximumf %5, %6 : vector<8x128xf32>
    %c0_6 = arith.constant 0 : index
    %c0_7 = arith.constant 0 : index
    %8 = vector.load %arg4[%c0_6, %c0_7] : memref<128x128xf32, #tpu.memory_space<vmem>>, vector<128x128xf32>
    %cst_8 = arith.constant dense<0.000000e+00> : vector<8x128xf32>
    %9 = tpu.matmul %7, %8, %cst_8 {dimension_numbers = #tpu.dot_dimension_numbers<[1], [0], [0], [1], [0, 0, 1, 1], [], []>} : vector<8x128xf32>, vector<128x128xf32>, vector<8x128xf32> -> vector<8x128xf32>
    %c0_9 = arith.constant 0 : index
    %c0_10 = arith.constant 0 : index
    %10 = vector.load %arg5[%c0_9, %c0_10] : memref<1x128xf32, #tpu.memory_space<vmem>>, vector<1x128xf32>
    %11 = vector.broadcast %10 : vector<1x128xf32> to vector<8x128xf32>
    %12 = arith.addf %9, %11 : vector<8x128xf32>
    %cst_11 = arith.constant 0.000000e+00 : f32
    %13 = vector.broadcast %cst_11 : f32 to vector<8x128xf32>
    %14 = arith.maximumf %12, %13 : vector<8x128xf32>
    %c0_12 = arith.constant 0 : index
    %c0_13 = arith.constant 0 : index
    %15 = vector.load %arg6[%c0_12, %c0_13] : memref<128x128xf32, #tpu.memory_space<vmem>>, vector<128x128xf32>
    %cst_14 = arith.constant dense<0.000000e+00> : vector<8x128xf32>
    %16 = tpu.matmul %14, %15, %cst_14 {dimension_numbers = #tpu.dot_dimension_numbers<[1], [0], [0], [1], [0, 0, 1, 1], [], []>} : vector<8x128xf32>, vector<128x128xf32>, vector<8x128xf32> -> vector<8x128xf32>
    %c0_15 = arith.constant 0 : index
    %c0_16 = arith.constant 0 : index
    %17 = vector.load %arg7[%c0_15, %c0_16] : memref<1x128xf32, #tpu.memory_space<vmem>>, vector<1x128xf32>
    %18 = vector.broadcast %17 : vector<1x128xf32> to vector<8x128xf32>
    %19 = arith.addf %16, %18 : vector<8x128xf32>
    %cst_17 = arith.constant 0.000000e+00 : f32
    %20 = vector.broadcast %cst_17 : f32 to vector<8x128xf32>
    %21 = arith.maximumf %19, %20 : vector<8x128xf32>
    %c0_18 = arith.constant 0 : index
    %c0_19 = arith.constant 0 : index
    %22 = vector.load %arg8[%c0_18, %c0_19] : memref<1x128xf32, #tpu.memory_space<vmem>>, vector<1x128xf32>
    %23 = vector.broadcast %22 : vector<1x128xf32> to vector<8x128xf32>
    %24 = arith.mulf %21, %23 : vector<8x128xf32>
    %cst_20 = arith.constant dense<0.000000e+00> : vector<8xf32>
    %25 = vector.multi_reduction <add>, %24, %cst_20 [1] : vector<8x128xf32> to vector<8xf32>
    %26 = vector.shape_cast %25 : vector<8xf32> to vector<8x1xf32>
    %c0_21 = arith.constant 0 : index
    %27 = memref.load %arg9[%c0_21] : memref<1xf32, #tpu.memory_space<smem>>
    %28 = vector.broadcast %27 : f32 to vector<8x1xf32>
    %29 = arith.addf %26, %28 : vector<8x1xf32>
    %c0_22 = arith.constant 0 : index
    %c0_23 = arith.constant 0 : index
    %30 = vector.load %arg10[%c0_22, %c0_23] : memref<128x128xf32, #tpu.memory_space<vmem>>, vector<128x128xf32>
    %cst_24 = arith.constant dense<0.000000e+00> : vector<8x128xf32>
    %31 = tpu.matmul %14, %30, %cst_24 {dimension_numbers = #tpu.dot_dimension_numbers<[1], [0], [0], [1], [0, 0, 1, 1], [], []>} : vector<8x128xf32>, vector<128x128xf32>, vector<8x128xf32> -> vector<8x128xf32>
    %c0_25 = arith.constant 0 : index
    %c0_26 = arith.constant 0 : index
    %32 = vector.load %arg11[%c0_25, %c0_26] : memref<1x128xf32, #tpu.memory_space<vmem>>, vector<1x128xf32>
    %33 = vector.broadcast %32 : vector<1x128xf32> to vector<8x128xf32>
    %34 = arith.addf %31, %33 : vector<8x128xf32>
    %cst_27 = arith.constant 0.000000e+00 : f32
    %35 = vector.broadcast %cst_27 : f32 to vector<8x128xf32>
    %36 = arith.maximumf %34, %35 : vector<8x128xf32>
    %c0_28 = arith.constant 0 : index
    %c0_29 = arith.constant 0 : index
    %37 = vector.load %arg12[%c0_28, %c0_29] : memref<128x128xf32, #tpu.memory_space<vmem>>, vector<128x128xf32>
    %cst_30 = arith.constant dense<0.000000e+00> : vector<8x128xf32>
    %38 = tpu.matmul %36, %37, %cst_30 {dimension_numbers = #tpu.dot_dimension_numbers<[1], [0], [0], [1], [0, 0, 1, 1], [], []>} : vector<8x128xf32>, vector<128x128xf32>, vector<8x128xf32> -> vector<8x128xf32>
    %c0_31 = arith.constant 0 : index
    %c0_32 = arith.constant 0 : index
    %39 = vector.load %arg13[%c0_31, %c0_32] : memref<1x128xf32, #tpu.memory_space<vmem>>, vector<1x128xf32>
    %40 = vector.broadcast %39 : vector<1x128xf32> to vector<8x128xf32>
    %41 = arith.addf %38, %40 : vector<8x128xf32>
    %cst_33 = arith.constant dense<0.000000e+00> : vector<8xf32>
    %42 = vector.multi_reduction <add>, %41, %cst_33 [1] : vector<8x128xf32> to vector<8xf32>
    %43 = vector.shape_cast %42 : vector<8xf32> to vector<8x1xf32>
    %cst_34 = arith.constant 2.500000e-01 : f32
    %44 = vector.broadcast %cst_34 : f32 to vector<8x1xf32>
    %45 = arith.mulf %43, %44 : vector<8x1xf32>
    %46 = vector.broadcast %29 : vector<8x1xf32> to vector<8x128xf32>
    %47 = arith.addf %46, %41 : vector<8x128xf32>
    %48 = vector.broadcast %45 : vector<8x1xf32> to vector<8x128xf32>
    %49 = arith.subf %47, %48 : vector<8x128xf32>
    %c0_35 = arith.constant 0 : index
    %c0_36 = arith.constant 0 : index
    %50 = vector.load %arg14[%c0_35, %c0_36] : memref<8x128xf32, #tpu.memory_space<vmem>>, vector<8x128xf32>
    tpu.vector_store %arg14[%c0_35, %c0_36], %49 {strides = array<i32>} : memref<8x128xf32, #tpu.memory_space<vmem>>, vector<8x128xf32>,
    return
  }
  func.func @transform_0(%arg0: i32) -> (i32, i32) {
    %c0_i32 = arith.constant 0 : i32
    %c0_i32_0 = arith.constant 0 : i32
    return %arg0, %c0_i32 : i32, i32
  }
  func.func @transform_1(%arg0: i32) -> (i32, i32) {
    %c0_i32 = arith.constant 0 : i32
    %c0_i32_0 = arith.constant 0 : i32
    %c0_i32_1 = arith.constant 0 : i32
    return %c0_i32, %c0_i32_0 : i32, i32
  }
  func.func @transform_2(%arg0: i32) -> (i32, i32) {
    %c0_i32 = arith.constant 0 : i32
    %c0_i32_0 = arith.constant 0 : i32
    %c0_i32_1 = arith.constant 0 : i32
    return %c0_i32, %c0_i32_0 : i32, i32
  }
  func.func @transform_3(%arg0: i32) -> (i32, i32) {
    %c0_i32 = arith.constant 0 : i32
    %c0_i32_0 = arith.constant 0 : i32
    %c0_i32_1 = arith.constant 0 : i32
    return %c0_i32, %c0_i32_0 : i32, i32
  }
  func.func @transform_4(%arg0: i32) -> (i32, i32) {
    %c0_i32 = arith.constant 0 : i32
    %c0_i32_0 = arith.constant 0 : i32
    %c0_i32_1 = arith.constant 0 : i32
    return %c0_i32, %c0_i32_0 : i32, i32
  }
  func.func @transform_5(%arg0: i32) -> (i32, i32) {
    %c0_i32 = arith.constant 0 : i32
    %c0_i32_0 = arith.constant 0 : i32
    %c0_i32_1 = arith.constant 0 : i32
    return %c0_i32, %c0_i32_0 : i32, i32
  }
  func.func @transform_6(%arg0: i32) -> (i32, i32) {
    %c0_i32 = arith.constant 0 : i32
    %c0_i32_0 = arith.constant 0 : i32
    %c0_i32_1 = arith.constant 0 : i32
    return %c0_i32, %c0_i32_0 : i32, i32
  }
  func.func @transform_7(%arg0: i32) -> (i32, i32) {
    %c0_i32 = arith.constant 0 : i32
    %c0_i32_0 = arith.constant 0 : i32
    %c0_i32_1 = arith.constant 0 : i32
    return %c0_i32, %c0_i32_0 : i32, i32
  }
  func.func @transform_8(%arg0: i32) -> i32 {
    %c0_i32 = arith.constant 0 : i32
    %c0_i32_0 = arith.constant 0 : i32
    return %c0_i32 : i32
  }
  func.func @transform_9(%arg0: i32) -> (i32, i32) {
    %c0_i32 = arith.constant 0 : i32
    %c0_i32_0 = arith.constant 0 : i32
    %c0_i32_1 = arith.constant 0 : i32
    return %c0_i32, %c0_i32_0 : i32, i32
  }
  func.func @transform_10(%arg0: i32) -> (i32, i32) {
    %c0_i32 = arith.constant 0 : i32
    %c0_i32_0 = arith.constant 0 : i32
    %c0_i32_1 = arith.constant 0 : i32
    return %c0_i32, %c0_i32_0 : i32, i32
  }
  func.func @transform_11(%arg0: i32) -> (i32, i32) {
    %c0_i32 = arith.constant 0 : i32
    %c0_i32_0 = arith.constant 0 : i32
    %c0_i32_1 = arith.constant 0 : i32
    return %c0_i32, %c0_i32_0 : i32, i32
  }
  func.func @transform_12(%arg0: i32) -> (i32, i32) {
    %c0_i32 = arith.constant 0 : i32
    %c0_i32_0 = arith.constant 0 : i32
    %c0_i32_1 = arith.constant 0 : i32
    return %c0_i32, %c0_i32_0 : i32, i32
  }
  func.func @transform_13(%arg0: i32) -> (i32, i32) {
    %c0_i32 = arith.constant 0 : i32
    %c0_i32_0 = arith.constant 0 : i32
    return %arg0, %c0_i32 : i32, i32
  }
}

</mosaic_0001>

<bundles_post_ra>
// kernel: qnet_twin_duel_forward.1
= control target key start
LH: loop header
LB: loop body
LE: loop exit
PB: predicated region body
PF: predicated region fallthrough
CT: control target
= control target key end

     0   :  { %19 = vsyncpa [#allocation4], 0  ;;  %s1277_s0 = inlined_call_operand.hbm [shape: f32[8,12], index: 0, kind: input, shape index: {}]   ;;  %s1278_s1 = inlined_call_operand.vmem [shape: f32[12,128], index: 1, kind: input, shape index: {}]   ;;  %s1279_s2 = inlined_call_operand.vmem [shape: f32[1,128], index: 2, kind: input, shape index: {}]   ;;  %s1280_s3 = inlined_call_operand.vmem [shape: f32[128,128], index: 3, kind: input, shape index: {}]   ;;  %s1281_s4 = inlined_call_operand.vmem [shape: f32[1,128], index: 4, kind: input, shape index: {}]   ;;  %s1282_s5 = inlined_call_operand.vmem [shape: f32[128,128], index: 5, kind: input, shape index: {}]   ;;  %s1283_s6 = inlined_call_operand.hbm [shape: f32[1,128], index: 6, kind: input, shape index: {}]   ;;  %s1284_s7 = inlined_call_operand.hbm [shape: f32[1,128], index: 7, kind: input, shape index: {}]   ;;  %s1285_s8 = inlined_call_operand.<no memory space> [shape: f32[1], index: 8, kind: input, shape index: {}]   ;;  %s1286_s9 = inlined_call_operand.vmem [shape: f32[128,128], index: 9, kind: input, shape index: {}]   ;;  %s1287_s10 = inlined_call_operand.hbm [shape: f32[1,128], index: 10, kind: input, shape index: {}]   ;;  %s1288_s11 = inlined_call_operand.vmem [shape: f32[128,128], index: 11, kind: input, shape index: {}]   ;;  %s1289_s12 = inlined_call_operand.vmem [shape: f32[1,128], index: 12, kind: input, shape index: {}]   ;;  %s1290_s13 = inlined_call_operand.vmem [shape: f32[8,128], index: 13, kind: output, shape index: {}]  }
   0x1   :  { %20 = vsyncpa [#allocation6], 0 }
   0x2   :  { %21 = vsyncpa [#allocation9], 0  ;;  %s900_s25 = smov [#allocation5]   ;;  %s901_s27 = smov [#allocation3]  }
   0x3   :  { %s48_s26 = sshll.u32 %s900_s25, 4  ;;  %s28_s28 = sshll.u32 %s901_s27, 4  ;;  %s49_s26 = int_to_ptr.vmem [resolvable:$true] %s48_s26  ;;  %s29_s28 = int_to_ptr.vmem [resolvable:$true] %s28_s28 }
   0x4   :  { %s822_s29 = scalar_lea.vmem %s49_s26, 16  ;;  %s826_s30 = scalar_lea.vmem %s49_s26, 32 }
   0x5   :  { %p823_p0 = scmp.ne.s32.totalorder %s49_s26, %s822_s29  ;;  %p827_p1 = scmp.lt.s32.totalorder %s49_s26, %s49_s26 }
   0x6   :  { %p828_p2 = scmp.lt.s32.totalorder %s826_s30, %s822_s29 }
   0x8   :  { %p829_p3 = por %p828_p2, %p827_p1 }
   0xa   :  { %p830_p4 = pnand %p829_p3, %p823_p0 }
   0xc   :  { %833 = shalt.err (!%p830_p4)
}
   0xd   :  { %51 = dma.hbm_to_vmem [thread:$0]  %s1283_s6, 16, %s49_s26, [#allocation6]  }
   0xe   :  { %s842_s16 = scalar_lea.vmem %s29_s28, 128  ;;  %p847_p6 = scmp.lt.s32.totalorder %s29_s28, %s29_s28 }
   0xf   :  { %p843_p5 = scmp.ne.s32.totalorder %s29_s28, %s842_s16  ;;  %p848_p7 = scmp.lt.s32.totalorder %s842_s16, %s842_s16 }
  0x11   :  { %p849_p8 = por %p848_p7, %p847_p6 }
  0x13   :  { %p850_p9 = pnand %p849_p8, %p843_p5 }
  0x15   :  { %853 = shalt.err (!%p850_p9)
}
  0x16   :  { %31 = dma.hbm_to_vmem [thread:$0]  %s1277_s0, 128, %s29_s28, [#allocation4]  }
  0x17   :  { %s902_s19 = smov [#allocation7]   ;;  %s903_s21 = smov [#allocation8]  }
  0x18   :  { %s58_s20 = sshll.u32 %s902_s19, 4  ;;  %s72_s22 = sshll.u32 %s903_s21, 4  ;;  %s59_s20 = int_to_ptr.vmem [resolvable:$true] %s58_s20  ;;  %s73_s22 = int_to_ptr.vmem [resolvable:$true] %s72_s22 }
  0x19   :  { %s862_s23 = scalar_lea.vmem %s59_s20, 16  ;;  %s866_s6 = scalar_lea.vmem %s59_s20, 32 }
  0x1a   :  { %p863_p10 = scmp.ne.s32.totalorder %s59_s20, %s862_s23  ;;  %p867_p11 = scmp.lt.s32.totalorder %s59_s20, %s59_s20 }
  0x1b   :  { %p868_p12 = scmp.lt.s32.totalorder %s866_s6, %s862_s23 }
  0x1d   :  { %p869_p13 = por %p868_p12, %p867_p11 }
  0x1f   :  { %p870_p0 = pnand %p869_p13, %p863_p10 }
  0x21   :  { %873 = shalt.err (!%p870_p0)
}
  0x22   :  { %61 = dma.hbm_to_vmem [thread:$0]  %s1284_s7, 16, %s59_s20, [#allocation6]  }
  0x23   :  { %s882_s26 = scalar_lea.vmem %s73_s22, 16  ;;  %s886_s0 = scalar_lea.vmem %s73_s22, 32 }
  0x24   :  { %p883_p1 = scmp.ne.s32.totalorder %s73_s22, %s882_s26  ;;  %p887_p2 = scmp.lt.s32.totalorder %s73_s22, %s73_s22 }
  0x25   :  { %p888_p3 = scmp.lt.s32.totalorder %s886_s0, %s882_s26 }
  0x27   :  { %p889_p4 = por %p888_p3, %p887_p2 }
  0x29   :  { %p890_p5 = pnand %p889_p4, %p883_p1 }
  0x2b   :  { %893 = shalt.err (!%p890_p5)
}
  0x2c   :  { %75 = dma.hbm_to_vmem [thread:$0]  %s1287_s10, 16, %s73_s22, [#allocation9]  }
  0x2d   :  { %894 = dma.done.wait [#allocation4], 128  }
  0x2e   :  { %895 = vsyncadd [#allocation4], 4294967168 }
  0x2f   :  { %896 = dma.done.wait [#allocation6], 32  }
  0x30   :  { %897 = vsyncadd [#allocation6], 4294967264 }
  0x31   :  { %898 = dma.done.wait [#allocation9], 16  }
  0x32   :  { %899 = vsyncadd [#allocation9], 4294967280  ;;  %v904_v0 = vmov 0.0   ;;  %vm905_vm0 = vmmov 0   ;;  %vm106_vm1 = vcmask 1043456   ;;  %v93_v2 = vld [vmem:[%s1278_s1] sm:$0xff] }
  0x33   :  { %661 = vmatprep.subr.mxu0 %v904_v0  ;;  %665 = vmatprep.mubr.msk.f32.mxu0 %vm905_vm0, %v904_v0  ;;  %v94_v1 = vld [vmem:[%s1278_s1 + $0x8] sm:$0xf]  ;;  %v92_v3 = vld [vmem:[#allocation3] sm:$0xff]  ;;  %vm102_vm2 = vcmask 97280   ;;  %v196_v4 = vld [vmem:[%s1280_s3 + $0x78] sm:$0xff] }
  0x34   :  { %668 = vmatprep.subr.mxu1 %v904_v0  ;;  %700 = vmatprep.mubr.msk.f32.mxu1 %vm905_vm0, %v904_v0  ;;  %v195_v5 = vld [vmem:[%s1280_s3 + $0x70] sm:$0xff]  ;;  %v194_v6 = vld [vmem:[%s1280_s3 + $0x68] sm:$0xff]  ;;  %v193_v7 = vld [vmem:[%s1280_s3 + $0x60] sm:$0xff] }
  0x35   :  { %662 = vmatpush3.msk.msra.mxu0 %vm106_vm1, %v94_v1  ;;  %669 = vmatpush3.msra.mxu1 %v196_v4  ;;  %v192_v8 = vld [vmem:[%s1280_s3 + $0x58] sm:$0xff]  ;;  %v191_v9 = vld [vmem:[%s1280_s3 + $0x50] sm:$0xff]  ;;  %v190_v10 = vld [vmem:[%s1280_s3 + $0x48] sm:$0xff] }
  0x36   :  { %663 = vmatprep.subr.mxu0 %v904_v0  ;;  %670 = vmatprep.subr.mxu1 %v904_v0  ;;  %v189_v11 = vld [vmem:[%s1280_s3 + $0x40] sm:$0xff]  ;;  %v188_v12 = vld [vmem:[%s1280_s3 + $0x38] sm:$0xff]  ;;  %v187_v13 = vld [vmem:[%s1280_s3 + $0x30] sm:$0xff] }
  0x37   :  { %664 = vmatpush3.msra.mxu0 %v93_v2  ;;  %671 = vmatpush3.msra.mxu1 %v195_v5  ;;  %v186_v14 = vld [vmem:[%s1280_s3 + $0x28] sm:$0xff]  ;;  %v185_v15 = vld [vmem:[%s1280_s3 + $0x20] sm:$0xff]  ;;  %v184_v16 = vld [vmem:[%s1280_s3 + $0x18] sm:$0xff] }
  0x38   :  { %666 = vmatmul.mubr.msk.f32.vlgmr.msra.gmra.mxu0 %vm102_vm2, %v92_v3  ;;  %672 = vmatprep.subr.mxu1 %v904_v0  ;;  %v183_v17 = vld [vmem:[%s1280_s3 + $0x10] sm:$0xff]  ;;  %v182_v18 = vld [vmem:[%s1280_s3 + $0x8] sm:$0xff]  ;;  %v181_v19 = vld [vmem:[%s1280_s3] sm:$0xff] }
  0x39   :  { %703 = vmatprep.subr.mxu0 %v904_v0  ;;  %673 = vmatpush3.msra.mxu1 %v194_v6  ;;  %v290_v20 = vld [vmem:[%s1282_s5 + $0x78] sm:$0xff]  ;;  %v289_v21 = vld [vmem:[%s1282_s5 + $0x70] sm:$0xff]  ;;  %v288_v22 = vld [vmem:[%s1282_s5 + $0x68] sm:$0xff] }
  0x3a   :  { %735 = vmatprep.mubr.msk.f32.mxu0 %vm905_vm0, %v904_v0  ;;  %674 = vmatprep.subr.mxu1 %v904_v0  ;;  %v287_v23 = vld [vmem:[%s1282_s5 + $0x60] sm:$0xff]  ;;  %v286_v24 = vld [vmem:[%s1282_s5 + $0x58] sm:$0xff]  ;;  %v285_v25 = vld [vmem:[%s1282_s5 + $0x50] sm:$0xff] }
  0x3b   :  { %675 = vmatpush3.msra.mxu1 %v193_v7  ;;  %704 = vmatpush3.msra.mxu0 %v290_v20  ;;  %v284_v26 = vld [vmem:[%s1282_s5 + $0x48] sm:$0xff]  ;;  %v283_v27 = vld [vmem:[%s1282_s5 + $0x40] sm:$0xff]  ;;  %v282_v28 = vld [vmem:[%s1282_s5 + $0x38] sm:$0xff] }
  0x3c   :  { %676 = vmatprep.subr.mxu1 %v904_v0  ;;  %705 = vmatprep.subr.mxu0 %v904_v0  ;;  %v281_v29 = vld [vmem:[%s1282_s5 + $0x30] sm:$0xff]  ;;  %v280_v30 = vld [vmem:[%s1282_s5 + $0x28] sm:$0xff]  ;;  %v279_v31 = vld [vmem:[%s1282_s5 + $0x20] sm:$0xff] }
  0x3d   :  { %677 = vmatpush3.msra.mxu1 %v192_v8  ;;  %706 = vmatpush3.msra.mxu0 %v289_v21  ;;  %v278_v32 = vld [vmem:[%s1282_s5 + $0x18] sm:$0xff]  ;;  %v582_v33 = vld [vmem:[%s1279_s2] ss:$0 sm:$0xff]  ;;  %v396_v39 = vld [vmem:[%s1286_s9 + $0x70] sm:$0xff] }
  0x3e   :  { %678 = vmatprep.subr.mxu1 %v904_v0  ;;  %707 = vmatprep.subr.mxu0 %v904_v0  ;;  %v397_v38 = vld [vmem:[%s1286_s9 + $0x78] sm:$0xff]  ;;  %v395_v40 = vld [vmem:[%s1286_s9 + $0x68] sm:$0xff]  ;;  %v394_v41 = vld [vmem:[%s1286_s9 + $0x60] sm:$0xff] }
  0x3f   :  { %679 = vmatpush3.msra.mxu1 %v191_v9  ;;  %708 = vmatpush3.msra.mxu0 %v288_v22  ;;  %v393_v42 = vld [vmem:[%s1286_s9 + $0x58] sm:$0xff]  ;;  %v392_v43 = vld [vmem:[%s1286_s9 + $0x50] sm:$0xff]  ;;  %v391_v44 = vld [vmem:[%s1286_s9 + $0x48] sm:$0xff] }
  0x40   :  { %680 = vmatprep.subr.mxu1 %v904_v0  ;;  %709 = vmatprep.subr.mxu0 %v904_v0  ;;  %v390_v45 = vld [vmem:[%s1286_s9 + $0x40] sm:$0xff]  ;;  %v389_v46 = vld [vmem:[%s1286_s9 + $0x38] sm:$0xff]  ;;  %v388_v47 = vld [vmem:[%s1286_s9 + $0x30] sm:$0xff] }
  0x41   :  { %681 = vmatpush3.msra.mxu1 %v190_v10  ;;  %710 = vmatpush3.msra.mxu0 %v287_v23  ;;  %v387_v48 = vld [vmem:[%s1286_s9 + $0x28] sm:$0xff]  ;;  %v386_v49 = vld [vmem:[%s1286_s9 + $0x20] sm:$0xff]  ;;  %v385_v50 = vld [vmem:[%s1286_s9 + $0x18] sm:$0xff] }
  0x42   :  { %682 = vmatprep.subr.mxu1 %v904_v0  ;;  %711 = vmatprep.subr.mxu0 %v904_v0  ;;  %v277_v51 = vld [vmem:[%s1282_s5 + $0x10] sm:$0xff]  ;;  %v276_v53 = vld [vmem:[%s1282_s5 + $0x8] sm:$0xff]  ;;  %v275_v55 = vld [vmem:[%s1282_s5] sm:$0xff] }
  0x43   :  { %683 = vmatpush3.msra.mxu1 %v189_v11  ;;  %712 = vmatpush3.msra.mxu0 %v286_v24  ;;  %v384_v52 = vld [vmem:[%s1286_s9 + $0x10] sm:$0xff]  ;;  %v383_v54 = vld [vmem:[%s1286_s9 + $0x8] sm:$0xff]  ;;  %v382_v56 = vld [vmem:[%s1286_s9] sm:$0xff] }
  0x44   :  { %684 = vmatprep.subr.mxu1 %v904_v0  ;;  %713 = vmatprep.subr.mxu0 %v904_v0  ;;  %v585_v57 = vld [vmem:[%s1281_s4] ss:$0 sm:$0xff]  ;;  %v491_v62 = vld [vmem:[%s1288_s11 + $0x78] sm:$0xff]  ;;  %v490_v63 = vld [vmem:[%s1288_s11 + $0x70] sm:$0xff] }
  0x45   :  { %685 = vmatpush3.msra.mxu1 %v188_v12  ;;  %714 = vmatpush3.msra.mxu0 %v285_v25  ;;  %v489_v1 = vld [vmem:[%s1288_s11 + $0x68] sm:$0xff]  ;;  %v488_v2 = vld [vmem:[%s1288_s11 + $0x60] sm:$0xff]  ;;  %v487_v3 = vld [vmem:[%s1288_s11 + $0x58] sm:$0xff] }
  0x46   :  { %686 = vmatprep.subr.mxu1 %v904_v0  ;;  %715 = vmatprep.subr.mxu0 %v904_v0  ;;  %v486_v4 = vld [vmem:[%s1288_s11 + $0x50] sm:$0xff]  ;;  %v485_v5 = vld [vmem:[%s1288_s11 + $0x48] sm:$0xff]  ;;  %v484_v6 = vld [vmem:[%s1288_s11 + $0x40] sm:$0xff] }
  0x47   :  { %687 = vmatpush3.msra.mxu1 %v187_v13  ;;  %716 = vmatpush3.msra.mxu0 %v284_v26  ;;  %v483_v7 = vld [vmem:[%s1288_s11 + $0x38] sm:$0xff]  ;;  %v482_v8 = vld [vmem:[%s1288_s11 + $0x30] sm:$0xff]  ;;  %v481_v9 = vld [vmem:[%s1288_s11 + $0x28] sm:$0xff] }
  0x48   :  { %688 = vmatprep.subr.mxu1 %v904_v0  ;;  %717 = vmatprep.subr.mxu0 %v904_v0  ;;  %v480_v10 = vld [vmem:[%s1288_s11 + $0x20] sm:$0xff]  ;;  %v479_v11 = vld [vmem:[%s1288_s11 + $0x18] sm:$0xff]  ;;  %v478_v12 = vld [vmem:[%s1288_s11 + $0x10] sm:$0xff] }
  0x49   :  { %689 = vmatpush3.msra.mxu1 %v186_v14  ;;  %718 = vmatpush3.msra.mxu0 %v283_v27  ;;  %v477_v13 = vld [vmem:[%s1288_s11 + $0x8] sm:$0xff]  ;;  %v476_v14 = vld [vmem:[%s1288_s11] sm:$0xff] }
  0x4a   :  { %690 = vmatprep.subr.mxu1 %v904_v0  ;;  %719 = vmatprep.subr.mxu0 %v904_v0  ;;  %v587_v23 = vld [vmem:[#allocation7] ss:$0 sm:$0xff] }
  0x4b   :  { %691 = vmatpush3.msra.mxu1 %v185_v15  ;;  %720 = vmatpush3.msra.mxu0 %v282_v28  ;;  %v586_v15 = vld [vmem:[#allocation5] ss:$0 sm:$0xff] }
  0x4c   :  { %692 = vmatprep.subr.mxu1 %v904_v0  ;;  %721 = vmatprep.subr.mxu0 %v904_v0 }
  0x4d   :  { %693 = vmatpush3.msra.mxu1 %v184_v16  ;;  %722 = vmatpush3.msra.mxu0 %v281_v29  ;;  %v588_v16 = vld [vmem:[#allocation8] ss:$0 sm:$0xff] }
  0x4e   :  { %694 = vmatprep.subr.mxu1 %v904_v0  ;;  %723 = vmatprep.subr.mxu0 %v904_v0 }
  0x4f   :  { %695 = vmatpush3.msra.mxu1 %v183_v17  ;;  %724 = vmatpush3.msra.mxu0 %v280_v30  ;;  %v380_v30 = vstv %s1285_s8 }
  0x50   :  { %696 = vmatprep.subr.mxu1 %v904_v0  ;;  %725 = vmatprep.subr.mxu0 %v904_v0 }
  0x51   :  { %697 = vmatpush3.msra.mxu1 %v182_v18  ;;  %726 = vmatpush3.msra.mxu0 %v279_v31 }
  0x52   :  { %698 = vmatprep.subr.mxu1 %v904_v0  ;;  %727 = vmatprep.subr.mxu0 %v904_v0 }
  0x53   :  { %699 = vmatpush3.msra.mxu1 %v181_v19  ;;  %728 = vmatpush3.msra.mxu0 %v278_v32 }
  0x54   :  { %738 = vmatprep.subr.mxu1 %v904_v0  ;;  %729 = vmatprep.subr.mxu0 %v904_v0 }
  0x55   :  { %730 = vmatpush3.msra.mxu0 %v277_v51 }
  0x56   :  { %731 = vmatprep.subr.mxu0 %v904_v0 }
  0x57   :  { %732 = vmatpush3.msra.mxu0 %v276_v53 }
  0x58   :  { %733 = vmatprep.subr.mxu0 %v904_v0 }
  0x59   :  { %734 = vmatpush3.msra.mxu0 %v275_v55 }
  0x5a   :  { %773 = vmatprep.subr.mxu0 %v904_v0 }
  0xf8   :  { %v176_v34 = vpop.f32.mrf.mxu0 }
  0xf9   :  { %v177_v35 = vadd.f32 %v582_v33, %v176_v34 }
  0xfa   :  { %v667_v36 = vpop.f32.mrf.mxu0 }
  0xfb   :  { %v180_v37 = vmax.f32 %v177_v35, 0.0 }
  0xfd   :  { %701 = vmatmul.mubr.f32.vlgmr.msra.gmra.mxu1 %v180_v37 }
  0xfe   :  { %739 = vmatpush3.msra.mxu1 %v397_v38  ;;  %770 = vmatprep.mubr.msk.f32.mxu1 %vm905_vm0, %v904_v0 }
  0xff   :  { %740 = vmatprep.subr.mxu1 %v904_v0 }
 0x100   :  { %741 = vmatpush3.msra.mxu1 %v396_v39 }
 0x101   :  { %742 = vmatprep.subr.mxu1 %v904_v0 }
 0x102   :  { %743 = vmatpush3.msra.mxu1 %v395_v40 }
 0x103   :  { %744 = vmatprep.subr.mxu1 %v904_v0 }
 0x104   :  { %745 = vmatpush3.msra.mxu1 %v394_v41 }
 0x105   :  { %746 = vmatprep.subr.mxu1 %v904_v0 }
 0x106   :  { %747 = vmatpush3.msra.mxu1 %v393_v42 }
 0x107   :  { %748 = vmatprep.subr.mxu1 %v904_v0 }
 0x108   :  { %749 = vmatpush3.msra.mxu1 %v392_v43 }
 0x109   :  { %750 = vmatprep.subr.mxu1 %v904_v0 }
 0x10a   :  { %751 = vmatpush3.msra.mxu1 %v391_v44 }
 0x10b   :  { %752 = vmatprep.subr.mxu1 %v904_v0 }
 0x10c   :  { %753 = vmatpush3.msra.mxu1 %v390_v45 }
 0x10d   :  { %754 = vmatprep.subr.mxu1 %v904_v0 }
 0x10e   :  { %755 = vmatpush3.msra.mxu1 %v389_v46 }
 0x10f   :  { %756 = vmatprep.subr.mxu1 %v904_v0 }
 0x110   :  { %757 = vmatpush3.msra.mxu1 %v388_v47 }
 0x111   :  { %758 = vmatprep.subr.mxu1 %v904_v0 }
 0x112   :  { %759 = vmatpush3.msra.mxu1 %v387_v48 }
 0x113   :  { %760 = vmatprep.subr.mxu1 %v904_v0 }
 0x114   :  { %761 = vmatpush3.msra.mxu1 %v386_v49 }
 0x115   :  { %762 = vmatprep.subr.mxu1 %v904_v0 }
 0x116   :  { %763 = vmatpush3.msra.mxu1 %v385_v50 }
 0x117   :  { %764 = vmatprep.subr.mxu1 %v904_v0 }
 0x118   :  { %765 = vmatpush3.msra.mxu1 %v384_v52 }
 0x119   :  { %766 = vmatprep.subr.mxu1 %v904_v0 }
 0x11a   :  { %767 = vmatpush3.msra.mxu1 %v383_v54 }
 0x11b   :  { %768 = vmatprep.subr.mxu1 %v904_v0 }
 0x11c   :  { %769 = vmatpush3.msra.mxu1 %v382_v56 }
 0x1bd   :  { %v270_v58 = vpop.f32.mrf.mxu1 }
 0x1be   :  { %v271_v59 = vadd.f32 %v585_v57, %v270_v58 }
 0x1bf   :  { %v702_v60 = vpop.f32.mrf.mxu1 }
 0x1c0   :  { %v274_v61 = vmax.f32 %v271_v59, 0.0 }
 0x1c2   :  { %736 = vmatmul.mubr.f32.vlgmr.msra.gmra.mxu0 %v274_v61  ;;  %771 = vmatmul.mubr.f32.vlgmr.msra.gmra.mxu1 %v274_v61 }
 0x1c3   :  { %774 = vmatpush3.msra.mxu0 %v491_v62  ;;  %805 = vmatprep.mubr.msk.f32.mxu0 %vm905_vm0, %v904_v0 }
 0x1c4   :  { %775 = vmatprep.subr.mxu0 %v904_v0 }
 0x1c5   :  { %776 = vmatpush3.msra.mxu0 %v490_v63 }
 0x1c6   :  { %777 = vmatprep.subr.mxu0 %v904_v0 }
 0x1c7   :  { %778 = vmatpush3.msra.mxu0 %v489_v1 }
 0x1c8   :  { %779 = vmatprep.subr.mxu0 %v904_v0 }
 0x1c9   :  { %780 = vmatpush3.msra.mxu0 %v488_v2 }
 0x1ca   :  { %781 = vmatprep.subr.mxu0 %v904_v0 }
 0x1cb   :  { %782 = vmatpush3.msra.mxu0 %v487_v3 }
 0x1cc   :  { %783 = vmatprep.subr.mxu0 %v904_v0 }
 0x1cd   :  { %784 = vmatpush3.msra.mxu0 %v486_v4 }
 0x1ce   :  { %785 = vmatprep.subr.mxu0 %v904_v0 }
 0x1cf   :  { %786 = vmatpush3.msra.mxu0 %v485_v5 }
 0x1d0   :  { %787 = vmatprep.subr.mxu0 %v904_v0 }
 0x1d1   :  { %788 = vmatpush3.msra.mxu0 %v484_v6 }
 0x1d2   :  { %789 = vmatprep.subr.mxu0 %v904_v0 }
 0x1d3   :  { %790 = vmatpush3.msra.mxu0 %v483_v7 }
 0x1d4   :  { %791 = vmatprep.subr.mxu0 %v904_v0 }
 0x1d5   :  { %792 = vmatpush3.msra.mxu0 %v482_v8 }
 0x1d6   :  { %793 = vmatprep.subr.mxu0 %v904_v0 }
 0x1d7   :  { %794 = vmatpush3.msra.mxu0 %v481_v9 }
 0x1d8   :  { %795 = vmatprep.subr.mxu0 %v904_v0 }
 0x1d9   :  { %796 = vmatpush3.msra.mxu0 %v480_v10 }
 0x1da   :  { %797 = vmatprep.subr.mxu0 %v904_v0 }
 0x1db   :  { %798 = vmatpush3.msra.mxu0 %v479_v11 }
 0x1dc   :  { %799 = vmatprep.subr.mxu0 %v904_v0 }
 0x1dd   :  { %800 = vmatpush3.msra.mxu0 %v478_v12 }
 0x1de   :  { %801 = vmatprep.subr.mxu0 %v904_v0 }
 0x1df   :  { %802 = vmatpush3.msra.mxu0 %v477_v13 }
 0x1e0   :  { %803 = vmatprep.subr.mxu0 %v904_v0  ;;  %v589_v0 = vld [vmem:[%s1289_s12] ss:$0 sm:$0xff] }
 0x1e1   :  { %804 = vmatpush3.msra.mxu0 %v476_v14 }
 0x282   :  { %v364_v17 = vpop.f32.mrf.mxu0  ;;  %v471_v18 = vpop.f32.mrf.mxu1 }
 0x283   :  { %v365_v19 = vadd.f32 %v586_v15, %v364_v17  ;;  %v472_v20 = vadd.f32 %v588_v16, %v471_v18 }
 0x284   :  { %v737_v21 = vpop.f32.mrf.mxu0  ;;  %v772_v22 = vpop.f32.mrf.mxu1 }
 0x285   :  { %v368_v24 = vmax.f32 %v365_v19, 0.0  ;;  %v475_v25 = vmax.f32 %v472_v20, 0.0 }
 0x287   :  { %806 = vmatmul.mubr.f32.vlgmr.msra.gmra.mxu0 %v475_v25  ;;  %v376_v26 = vmul.f32 %v587_v23, %v368_v24 }
 0x289   :  { %377 = vadd.xlane.f32.xlu0 %v376_v26 }
 0x312   :  { %v378_v31 = vpop.xlane.xlu0 %377 }
 0x313   :  { %v381_v32 = vadd.f32 %v380_v30, %v378_v31 }
 0x347   :  { %v565_v27 = vpop.f32.mrf.mxu0 }
 0x348   :  { %v566_v28 = vadd.f32 %v589_v0, %v565_v27 }
 0x349   :  { %v807_v29 = vpop.f32.mrf.mxu0 }
 0x34a   :  { %569 = vadd.xlane.f32.xlu0 %v566_v28  ;;  %v572_v34 = vadd.f32 %v566_v28, %v381_v32 }
 0x3d3   :  { %v570_v33 = vpop.xlane.xlu0 %569 }
 0x3d4   :  { %v571_v35 = vmul.f32 0.25, %v570_v33 }
 0x3d6   :  { %v573_v36 = vsub.f32 %v572_v34, %v571_v35 }
 0x3d8   :  { %574 = vst [vmem:[%s1290_s13] sm:$0xff] %v573_v36 }
 0x3d9   :  { %579 = vsyncpa [#allocation4], 1 }
 0x3da   :  { %580 = vsyncpa [#allocation6], 1 }
 0x3db   :  { %581 = vsyncpa [#allocation9], 1 }

</bundles_post_ra>
